<compile_context>
chip_gen: v6e
topology: v6e:2x2x1
jax: 0.10.0
libtpu: 0.0.40
codegen_flags: <defaults>
</compile_context>

<pallas_src>
import functools

import jax
import jax.numpy as jnp
from jax.experimental import pallas as pl
from jax.experimental.pallas import tpu as pltpu

_LANE = 128


def _round_up(x, m):
    return ((x + m - 1) // m) * m


def _vmem_defaults():
    """Derive VMEM budget/limit from the chip (v5e/v6e: 128 MiB, v7x: 64 MiB/TC)."""
    cap = 64 * 1024 * 1024  # conservative fallback (v7x-sized)
    try:
        info = pltpu.get_tpu_info()
        cap = int(getattr(info, "vmem_capacity_bytes", cap)) or cap
    except Exception:
        pass
    limit = min(cap * 7 // 8, 112 * 1024 * 1024)   # ~56 MiB on v7x, ~112 MiB on v5e/v6e
    budget = limit * 3 // 4                        # headroom for compiler scratch
    return budget, limit


# ----------------------------- Pallas kernel --------------------------------
def _adapter_kernel(x_ref, res_ref, wa_ref, ba_ref, wb_ref, bb_ref, o_ref, *,
                    act):
    # x_ref:   (TN, dim_pad)     VMEM tile of input rows (io dtype)
    # res_ref: (TN, dim_pad)     VMEM tile of residual rows (native dtype)
    # wa_ref:  (dim_pad, r_pad)  souped down-proj weight (pre-transposed, padded)
    # ba_ref:  (1, r_pad)        souped down-proj bias (f32, padded)
    # wb_ref:  (r_pad, dim_pad)  souped up-proj weight (pre-transposed, padded)
    # bb_ref:  (1, dim_pad)      souped up-proj bias (f32, padded)
    x = x_ref[...]
    # down projection: F.linear(x, W_A, b_A) == x @ W_A^T + b_A  (f32 accumulate)
    h = jnp.dot(x, wa_ref[...], preferred_element_type=jnp.float32)
    h = h + ba_ref[...]
    if act == "relu":
        h = jnp.maximum(h, 0.0)
    elif act == "gelu":
        # exact erf form to match torch.nn.functional.gelu default
        h = jax.nn.gelu(h, approximate=False)
    # (act is None by default in ExpertSoup -> no activation)
    # Padded lanes of h multiply zero rows of W_B^T, so the padding stays exact
    # regardless of act(0).
    # up projection: F.linear(h, W_B, b_B) == h @ W_B^T + b_B
    z = jnp.dot(h.astype(wb_ref.dtype), wb_ref[...],
                preferred_element_type=jnp.float32)
    z = z + bb_ref[...] + res_ref[...].astype(jnp.float32)
    o_ref[...] = z.astype(o_ref.dtype)


def _fused_adapter(x2d, res2d, wa_t, ba2d, wb_t, bb2d, *, act=None,
                   tile_n=None, weight_dtype=None,
                   vmem_budget_bytes=None, vmem_limit_bytes=None):
    """Fused adapter forward on flattened rows.

    x2d    : [N, dim]   residual res2d : [N, dim] (native dtype, not pre-cast)
    wa_t   : [dim, r]   (W_A^T, souped)      ba2d : [1, r]
    wb_t   : [r, dim]   (W_B^T, souped)      bb2d : [1, dim]
    """
    N, dim = x2d.shape
    r = wa_t.shape[1]
    io_dtype = x2d.dtype
    res_dtype = res2d.dtype
    # Output dtype follows the promoted add `out + residual` (PyTorch semantics).
    out_dtype = jnp.result_type(io_dtype, res_dtype)
    # Weights default to the activation dtype; pass jnp.bfloat16 to halve their
    # HBM read / VMEM footprint when the model tolerates it.
    w_dtype = jnp.dtype(weight_dtype) if weight_dtype is not None else jnp.dtype(io_dtype)

    sub = 16 if io_dtype == jnp.bfloat16 else 8  # min sublane tile

    # Lane-dense padding of the small dims only: rank and feature dim up to
    # multiples of 128 so the intermediate h, the bias adds / activation and
    # the output stores all run full-width (no masked vst.msk).  Zero padding
    # is exact (pad cols of x, pad rows/cols of W/b are zero).
    r_pad = _round_up(max(r, _LANE), _LANE)
    dim_pad = _round_up(dim, _LANE)

    if vmem_budget_bytes is None or vmem_limit_bytes is None:
        d_budget, d_limit = _vmem_defaults()
        vmem_budget_bytes = d_budget if vmem_budget_bytes is None else vmem_budget_bytes
        vmem_limit_bytes = d_limit if vmem_limit_bytes is None else vmem_limit_bytes

    x_it = jnp.dtype(io_dtype).itemsize
    r_it = jnp.dtype(res_dtype).itemsize
    o_it = jnp.dtype(out_dtype).itemsize
    w_it = jnp.dtype(w_dtype).itemsize

    if tile_n is None:
        # resident (single-buffered) weights/biases
        w_bytes = 2 * dim_pad * r_pad * w_it + (r_pad + dim_pad) * 4
        avail = max(vmem_budget_bytes - w_bytes, 1 << 20)
        # per-row VMEM: double-buffered x/res/out streams + in-kernel f32 temps
        # (z + cast ~ 8*dim_pad, h + cast ~ 8*r_pad).
        per_row = 2 * dim_pad * (x_it + r_it + o_it) + 8 * dim_pad + 8 * r_pad
        tile_n = int(max(sub, min(1024, avail // per_row)))
    # Keep the 1-D row grid deep enough for megacore split (v7x, 2 TCs) and
    # DMA/compute overlap: aim for >=8 grid steps, with a ~512-row floor.
    balance_cap = max(_round_up(pl.cdiv(N, 8), sub),
                      min(512, _round_up(N, sub)))
    tile_n = max(sub, (int(tile_n) // sub) * sub)
    tile_n = min(tile_n, _round_up(N, sub), balance_cap)
    grid = pl.cdiv(N, tile_n)

    # Column padding of the big row streams only when dim is not a multiple of
    # 128 (rare for transformer dims); otherwise x/res stream straight from HBM.
    if dim_pad != dim:
        x_in = jnp.pad(x2d, ((0, 0), (0, dim_pad - dim)))
        res_in = jnp.pad(res2d, ((0, 0), (0, dim_pad - dim)))
    else:
        x_in = x2d
        res_in = res2d

    def pad2(a, n0, n1, dtype):
        a = a.astype(dtype)
        return jnp.pad(a, ((0, n0 - a.shape[0]), (0, n1 - a.shape[1])))

    wa_p = pad2(wa_t, dim_pad, r_pad, w_dtype)
    wb_p = pad2(wb_t, r_pad, dim_pad, w_dtype)
    ba_p = pad2(ba2d, 1, r_pad, jnp.float32)
    bb_p = pad2(bb2d, 1, dim_pad, jnp.float32)

    resident = pl.Buffered(1)   # constant index_map -> single buffer is enough
    kernel = functools.partial(_adapter_kernel, act=act)
    out = pl.pallas_call(
        kernel,
        out_shape=jax.ShapeDtypeStruct((N, dim_pad), out_dtype),
        grid=(grid,),
        in_specs=[
            pl.BlockSpec((tile_n, dim_pad), lambda i: (i, 0)),   # x rows
            pl.BlockSpec((tile_n, dim_pad), lambda i: (i, 0)),   # residual rows
            pl.BlockSpec((dim_pad, r_pad), lambda i: (0, 0),     # W_A^T (resident)
                         pipeline_mode=resident),
            pl.BlockSpec((1, r_pad), lambda i: (0, 0),           # b_A   (resident)
                         pipeline_mode=resident),
            pl.BlockSpec((r_pad, dim_pad), lambda i: (0, 0),     # W_B^T (resident)
                         pipeline_mode=resident),
            pl.BlockSpec((1, dim_pad), lambda i: (0, 0),         # b_B   (resident)
                         pipeline_mode=resident),
        ],
        out_specs=pl.BlockSpec((tile_n, dim_pad), lambda i: (i, 0)),
        compiler_params=pltpu.CompilerParams(
            dimension_semantics=("parallel",),       # megacore split on v7x
            vmem_limit_bytes=int(vmem_limit_bytes)),
    )(x_in, res_in, wa_p, ba_p, wb_p, bb_p)
    return out if dim_pad == dim else out[:, :dim]


# ------------------------- ExpertSoup module (JAX) ---------------------------
def init_expert_soup_params(key, dim, r, num_expert=4):
    """Deterministic init matching the shapes of ExpertSoup.__init__.

    MoA_A: num_expert copies of nn.Linear(dim, r)  -> W [E, r, dim], b [E, r]
    MoA_B: num_expert copies of nn.Linear(r, dim)  -> W [E, dim, r], b [E, dim]
    expert_score_weight: zeros([E]) for each MixtureSoup.
    """
    kA_w, kA_b, kB_w, kB_b = jax.random.split(key, 4)
    bound_a = 1.0 / jnp.sqrt(dim)  # PyTorch Linear init bound (fan_in = dim)
    bound_b = 1.0 / jnp.sqrt(r)    # fan_in = r
    return {
        "A_weight": jax.random.uniform(kA_w, (num_expert, r, dim),
                                       jnp.float32, -bound_a, bound_a),
        "A_bias": jax.random.uniform(kA_b, (num_expert, r),
                                     jnp.float32, -bound_a, bound_a),
        "A_score": jnp.zeros((num_expert,), jnp.float32),
        "B_weight": jax.random.uniform(kB_w, (num_expert, dim, r),
                                       jnp.float32, -bound_b, bound_b),
        "B_bias": jax.random.uniform(kB_b, (num_expert, dim),
                                     jnp.float32, -bound_b, bound_b),
        "B_score": jnp.zeros((num_expert,), jnp.float32),
    }


def _soup(params):
    """Softmax-weighted 'soup' of expert weights (parameter glue, plain JAX)."""
    sA = jax.nn.softmax(params["A_score"])          # zeros -> uniform 1/E
    sB = jax.nn.softmax(params["B_score"])
    WA = jnp.einsum("e,erd->rd", sA, params["A_weight"])   # [r, dim]
    bA = jnp.einsum("e,er->r", sA, params["A_bias"])       # [r]
    WB = jnp.einsum("e,edr->dr", sB, params["B_weight"])   # [dim, r]
    bB = jnp.einsum("e,ed->d", sB, params["B_bias"])       # [dim]
    return WA, bA, WB, bB


def expert_soup_forward(params, x, residual, act=None, tile_n=None,
                        weight_dtype=None):
    """x, residual: [batch, seq, dim]  -> [batch, seq, dim] (promoted dtype)."""
    WA, bA, WB, bB = _soup(params)
    batch, seq, dim = x.shape
    r = WA.shape[0]
    out2d = _fused_adapter(
        x.reshape(batch * seq, dim),
        residual.reshape(batch * seq, dim),
        WA.T,                       # [dim, r]
        bA.reshape(1, r),           # [1, r]
        WB.T,                       # [r, dim]
        bB.reshape(1, dim),         # [1, dim]
        act=act,
        tile_n=tile_n,
        weight_dtype=weight_dtype,
    )
    return out2d.reshape(batch, seq, dim)


# --------------------------------- main --------------------------------------
if __name__ == "__main__":
    dim, r, num_expert = 32, 8, 4
    batch, seq = 2, 8

    key = jax.random.PRNGKey(0)
    k_param, k_x, k_res = jax.random.split(key, 3)

    params = init_expert_soup_params(k_param, dim, r, num_expert)
    x = jax.random.normal(k_x, (batch, seq, dim), jnp.float32)
    residual = jax.random.normal(k_res, (batch, seq, dim), jnp.float32)

    # pure-JAX reference of the deterministic soup path
    WA, bA, WB, bB = _soup(params)
    ref_none = (x @ WA.T + bA) @ WB.T + bB + residual
    ref_relu = jnp.maximum(x @ WA.T + bA, 0.0) @ WB.T + bB + residual

    out_none = jax.block_until_ready(expert_soup_forward(params, x, residual, act=None))
    assert jnp.allclose(out_none, ref_none, atol=1e-5, rtol=1e-5), "mismatch (act=None)"

    out_relu = jax.block_until_ready(expert_soup_forward(params, x, residual, act="relu"))
    assert jnp.allclose(out_relu, ref_relu, atol=1e-5, rtol=1e-5), "mismatch (act=relu)"

    # mixed precision: bf16 activations + f32 residual -> f32 output (promoted add)
    x_bf16 = x.astype(jnp.bfloat16)
    out_mixed = jax.block_until_ready(
        expert_soup_forward(params, x_bf16, residual, act=None))
    ref_mixed = (x_bf16.astype(jnp.float32) @ WA.T + bA) @ WB.T + bB + residual
    assert out_mixed.dtype == jnp.float32, "output not promoted to f32"
    assert jnp.allclose(out_mixed, ref_mixed, atol=5e-2, rtol=5e-2), "mismatch (bf16 x)"

    # TODO(synk): training-mode random expert selection and inference_level 0/1
    # (torch.randint masking of per-expert outputs) are non-deterministic RNG
    # paths; only the deterministic soup path (inference_level == 3) is kernelized.
    print("KERNEL_OK")
</pallas_src>

<mosaic_0001>
module attributes {stable_mosaic.version = 11 : i64} {
  func.func @_adapter_kernel(%arg0: i32, %arg1: memref<16x128xf32, #tpu.memory_space<vmem>>, %arg2: memref<16x128xf32, #tpu.memory_space<vmem>>, %arg3: memref<128x128xf32, #tpu.memory_space<vmem>>, %arg4: memref<1x128xf32, #tpu.memory_space<vmem>>, %arg5: memref<128x128xf32, #tpu.memory_space<vmem>>, %arg6: memref<1x128xf32, #tpu.memory_space<vmem>>, %arg7: memref<16x128xf32, #tpu.memory_space<vmem>>) attributes {dimension_semantics = [#tpu.dimension_semantics<parallel>], iteration_bounds = array<i64: 1>, scalar_prefetch = 0 : i64, scratch_operands = 0 : i64, tpu.core_type = #tpu.core_type<tc>, window_params = [{transform_indices = @transform_0, window_bounds = array<i64: 16, 128>}, {transform_indices = @transform_1, window_bounds = array<i64: 16, 128>}, {pipeline_mode = #tpu.pipeline_mode<synchronous>, transform_indices = @transform_2, window_bounds = array<i64: 128, 128>}, {pipeline_mode = #tpu.pipeline_mode<synchronous>, transform_indices = @transform_3, window_bounds = array<i64: 1, 128>}, {pipeline_mode = #tpu.pipeline_mode<synchronous>, transform_indices = @transform_4, window_bounds = array<i64: 128, 128>}, {pipeline_mode = #tpu.pipeline_mode<synchronous>, transform_indices = @transform_5, window_bounds = array<i64: 1, 128>}, {transform_indices = @transform_6, window_bounds = array<i64: 16, 128>}]} {
    %c0 = arith.constant 0 : index
    %c0_0 = arith.constant 0 : index
    %0 = vector.load %arg1[%c0, %c0_0] : memref<16x128xf32, #tpu.memory_space<vmem>>, vector<16x128xf32>
    %c0_1 = arith.constant 0 : index
    %c0_2 = arith.constant 0 : index
    %1 = vector.load %arg3[%c0_1, %c0_2] : memref<128x128xf32, #tpu.memory_space<vmem>>, vector<128x128xf32>
    %cst = arith.constant dense<0.000000e+00> : vector<16x128xf32>
    %2 = tpu.matmul %0, %1, %cst {dimension_numbers = #tpu.dot_dimension_numbers<[1], [0], [0], [1], [0, 0, 1, 1], [], []>} : vector<16x128xf32>, vector<128x128xf32>, vector<16x128xf32> -> vector<16x128xf32>
    %c0_3 = arith.constant 0 : index
    %c0_4 = arith.constant 0 : index
    %3 = vector.load %arg4[%c0_3, %c0_4] : memref<1x128xf32, #tpu.memory_space<vmem>>, vector<1x128xf32>
    %4 = vector.broadcast %3 : vector<1x128xf32> to vector<16x128xf32>
    %5 = arith.addf %2, %4 : vector<16x128xf32>
    %c0_5 = arith.constant 0 : index
    %c0_6 = arith.constant 0 : index
    %6 = vector.load %arg5[%c0_5, %c0_6] : memref<128x128xf32, #tpu.memory_space<vmem>>, vector<128x128xf32>
    %cst_7 = arith.constant dense<0.000000e+00> : vector<16x128xf32>
    %7 = tpu.matmul %5, %6, %cst_7 {dimension_numbers = #tpu.dot_dimension_numbers<[1], [0], [0], [1], [0, 0, 1, 1], [], []>} : vector<16x128xf32>, vector<128x128xf32>, vector<16x128xf32> -> vector<16x128xf32>
    %c0_8 = arith.constant 0 : index
    %c0_9 = arith.constant 0 : index
    %8 = vector.load %arg6[%c0_8, %c0_9] : memref<1x128xf32, #tpu.memory_space<vmem>>, vector<1x128xf32>
    %9 = vector.broadcast %8 : vector<1x128xf32> to vector<16x128xf32>
    %10 = arith.addf %7, %9 : vector<16x128xf32>
    %c0_10 = arith.constant 0 : index
    %c0_11 = arith.constant 0 : index
    %11 = vector.load %arg2[%c0_10, %c0_11] : memref<16x128xf32, #tpu.memory_space<vmem>>, vector<16x128xf32>
    %12 = arith.addf %10, %11 : vector<16x128xf32>
    %c0_12 = arith.constant 0 : index
    %c0_13 = arith.constant 0 : index
    %13 = vector.load %arg7[%c0_12, %c0_13] : memref<16x128xf32, #tpu.memory_space<vmem>>, vector<16x128xf32>
    tpu.vector_store %arg7[%c0_12, %c0_13], %12 {strides = array<i32>} : memref<16x128xf32, #tpu.memory_space<vmem>>, vector<16x128xf32>,
    return
  }
  func.func @transform_0(%arg0: i32) -> (i32, i32) {
    %c0_i32 = arith.constant 0 : i32
    %c0_i32_0 = arith.constant 0 : i32
    return %arg0, %c0_i32 : i32, i32
  }
  func.func @transform_1(%arg0: i32) -> (i32, i32) {
    %c0_i32 = arith.constant 0 : i32
    %c0_i32_0 = arith.constant 0 : i32
    return %arg0, %c0_i32 : i32, i32
  }
  func.func @transform_2(%arg0: i32) -> (i32, i32) {
    %c0_i32 = arith.constant 0 : i32
    %c0_i32_0 = arith.constant 0 : i32
    %c0_i32_1 = arith.constant 0 : i32
    return %c0_i32, %c0_i32_0 : i32, i32
  }
  func.func @transform_3(%arg0: i32) -> (i32, i32) {
    %c0_i32 = arith.constant 0 : i32
    %c0_i32_0 = arith.constant 0 : i32
    %c0_i32_1 = arith.constant 0 : i32
    return %c0_i32, %c0_i32_0 : i32, i32
  }
  func.func @transform_4(%arg0: i32) -> (i32, i32) {
    %c0_i32 = arith.constant 0 : i32
    %c0_i32_0 = arith.constant 0 : i32
    %c0_i32_1 = arith.constant 0 : i32
    return %c0_i32, %c0_i32_0 : i32, i32
  }
  func.func @transform_5(%arg0: i32) -> (i32, i32) {
    %c0_i32 = arith.constant 0 : i32
    %c0_i32_0 = arith.constant 0 : i32
    %c0_i32_1 = arith.constant 0 : i32
    return %c0_i32, %c0_i32_0 : i32, i32
  }
  func.func @transform_6(%arg0: i32) -> (i32, i32) {
    %c0_i32 = arith.constant 0 : i32
    %c0_i32_0 = arith.constant 0 : i32
    return %arg0, %c0_i32 : i32, i32
  }
}

</mosaic_0001>

<bundles_post_ra>
// kernel: tpu_custom_call.1
= control target key start
LH: loop header
LB: loop body
LE: loop exit
PB: predicated region body
PF: predicated region fallthrough
CT: control target
= control target key end

     0   :  { %11 = vsyncpa [#allocation3], 0  ;;  %s603_s0 = inlined_call_operand.hbm [shape: f32[16,128], index: 0, kind: input, shape index: {}]   ;;  %s604_s1 = inlined_call_operand.hbm [shape: f32[16,128], index: 1, kind: input, shape index: {}]   ;;  %s605_s2 = inlined_call_operand.hbm [shape: f32[128,128], index: 2, kind: input, shape index: {}]   ;;  %s606_s3 = inlined_call_operand.vmem [shape: f32[1,128], index: 3, kind: input, shape index: {}]   ;;  %s607_s4 = inlined_call_operand.hbm [shape: f32[128,128], index: 4, kind: input, shape index: {}]   ;;  %s608_s5 = inlined_call_operand.vmem [shape: f32[1,128], index: 5, kind: input, shape index: {}]   ;;  %s609_s6 = inlined_call_operand.hbm [shape: f32[16,128], index: 6, kind: output, shape index: {}]  }
   0x1   :  { %12 = vsyncpa [#allocation6], 0 }
   0x2   :  { %13 = vsyncpa [#allocation9], 0 }
   0x3   :  { %14 = vsyncpa [#allocation4], 0  ;;  %s525_s21 = smov [#allocation5]   ;;  %s526_s23 = smov [#allocation2]  }
   0x4   :  { %s32_s22 = sshll.u32 %s525_s21, 4  ;;  %s20_s24 = sshll.u32 %s526_s23, 4  ;;  %s33_s22 = int_to_ptr.vmem [resolvable:$true] %s32_s22  ;;  %s21_s24 = int_to_ptr.vmem [resolvable:$true] %s20_s24 }
   0x5   :  { %s425_s25 = scalar_lea.vmem %s33_s22, 256  ;;  %p430_p1 = scmp.lt.s32.totalorder %s33_s22, %s33_s22 }
   0x6   :  { %p426_p0 = scmp.ne.s32.totalorder %s33_s22, %s425_s25  ;;  %p431_p2 = scmp.lt.s32.totalorder %s425_s25, %s425_s25 }
   0x8   :  { %p432_p3 = por %p431_p2, %p430_p1 }
   0xa   :  { %p433_p4 = pnand %p432_p3, %p426_p0 }
   0xc   :  { %436 = shalt.err (!%p433_p4)
}
   0xd   :  { %s527_s26 = smov 128   ;;  %s528_s27 = smov 8  }
   0xe   :  { %38 = dma.hbm_to_vmem [thread:$0]  %s604_s1, 256, %s33_s22, [#allocation6], %s527_s26, %s527_s26, %s528_s27  }
   0xf   :  { %s445_s30 = scalar_lea.vmem %s21_s24, 256  ;;  %p450_p6 = scmp.lt.s32.totalorder %s21_s24, %s21_s24 }
  0x10   :  { %p446_p5 = scmp.ne.s32.totalorder %s21_s24, %s445_s30  ;;  %p451_p7 = scmp.lt.s32.totalorder %s445_s30, %s445_s30 }
  0x12   :  { %p452_p8 = por %p451_p7, %p450_p6 }
  0x14   :  { %p453_p9 = pnand %p452_p8, %p446_p5 }
  0x16   :  { %456 = shalt.err (!%p453_p9)
}
  0x17   :  { %26 = dma.hbm_to_vmem [thread:$0]  %s603_s0, 256, %s21_s24, [#allocation3], %s527_s26, %s527_s26, %s528_s27  }
  0x18   :  { %s529_s9 = smov [#allocation7]   ;;  %s530_s11 = smov [#allocation8]  }
  0x19   :  { %s44_s10 = sshll.u32 %s529_s9, 4  ;;  %s58_s12 = sshll.u32 %s530_s11, 4  ;;  %s45_s10 = int_to_ptr.vmem [resolvable:$true] %s44_s10  ;;  %s59_s12 = int_to_ptr.vmem [resolvable:$true] %s58_s12 }
  0x1a   :  { %s465_s1 = scalar_lea.vmem %s45_s10, 2048  ;;  %p470_p11 = scmp.lt.s32.totalorder %s45_s10, %s45_s10 }
  0x1b   :  { %p466_p10 = scmp.ne.s32.totalorder %s45_s10, %s465_s1  ;;  %p471_p12 = scmp.lt.s32.totalorder %s465_s1, %s465_s1 }
  0x1d   :  { %p472_p13 = por %p471_p12, %p470_p11 }
  0x1f   :  { %p473_p0 = pnand %p472_p13, %p466_p10 }
  0x21   :  { %476 = shalt.err (!%p473_p0)
}
  0x22   :  { %50 = dma.hbm_to_vmem [thread:$0]  %s605_s2, 2048, %s45_s10, [#allocation6], %s527_s26, %s527_s26, %s528_s27  }
  0x23   :  { %s485_s0 = scalar_lea.vmem %s59_s12, 2048  ;;  %p490_p2 = scmp.lt.s32.totalorder %s59_s12, %s59_s12 }
  0x24   :  { %p486_p1 = scmp.ne.s32.totalorder %s59_s12, %s485_s0  ;;  %p491_p3 = scmp.lt.s32.totalorder %s485_s0, %s485_s0 }
  0x26   :  { %p492_p4 = por %p491_p3, %p490_p2 }
  0x28   :  { %p493_p5 = pnand %p492_p4, %p486_p1 }
  0x2a   :  { %496 = shalt.err (!%p493_p5)
}
  0x2b   :  { %64 = dma.hbm_to_vmem [thread:$0]  %s607_s4, 2048, %s59_s12, [#allocation9], %s527_s26, %s527_s26, %s528_s27  }
  0x2c   :  { %517 = dma.done.wait [#allocation3], 256  }
  0x2d   :  { %518 = vsyncadd [#allocation3], 4294967040 }
  0x2e   :  { %519 = dma.done.wait [#allocation6], 2304  }
  0x2f   :  { %520 = vsyncadd [#allocation6], 4294964992 }
  0x30   :  { %521 = dma.done.wait [#allocation9], 2048  }
  0x31   :  { %522 = vsyncadd [#allocation9], 4294965248  ;;  %v96_v0 = vld [vmem:[#allocation7 + $0x78] sm:$0xff]  ;;  %v95_v1 = vld [vmem:[#allocation7 + $0x70] sm:$0xff]  ;;  %s531_s19 = smov [#allocation10]  }
  0x32   :  { %340 = vmatprep.subr.mxu0 %v96_v0  ;;  %v94_v2 = vld [vmem:[#allocation7 + $0x68] sm:$0xff]  ;;  %v93_v3 = vld [vmem:[#allocation7 + $0x60] sm:$0xff]  ;;  %v92_v5 = vld [vmem:[#allocation7 + $0x58] sm:$0xff]  ;;  %s288_s20 = sshll.u32 %s531_s19, 4  ;;  %s289_s20 = int_to_ptr.vmem [resolvable:$true] %s288_s20 }
  0x33   :  { %341 = vmatpush3.msra.mxu0 %v96_v0  ;;  %v79_v4 = vld [vmem:[#allocation2] sm:$0xff]  ;;  %v194_v6 = vld [vmem:[#allocation8 + $0x78] sm:$0xff]  ;;  %v193_v7 = vld [vmem:[#allocation8 + $0x70] sm:$0xff]  ;;  %p502_p7 = scmp.lt.s32.totalorder %s289_s20, %s289_s20 }
  0x34   :  { %342 = vmatprep.subr.mxu0 %v95_v1  ;;  %372 = vmatprep.mubr.f32.mxu0 %v79_v4  ;;  %v91_v8 = vld [vmem:[#allocation7 + $0x50] sm:$0xff]  ;;  %v192_v9 = vld [vmem:[#allocation8 + $0x68] sm:$0xff]  ;;  %v191_v11 = vld [vmem:[#allocation8 + $0x60] sm:$0xff] }
  0x35   :  { %343 = vmatpush3.msra.mxu0 %v95_v1  ;;  %375 = vmatprep.subr.mxu1 %v194_v6  ;;  %v90_v10 = vld [vmem:[#allocation7 + $0x48] sm:$0xff]  ;;  %v89_v12 = vld [vmem:[#allocation7 + $0x40] sm:$0xff]  ;;  %v190_v13 = vld [vmem:[#allocation8 + $0x58] sm:$0xff] }
  0x36   :  { %344 = vmatprep.subr.mxu0 %v94_v2  ;;  %376 = vmatpush3.msra.mxu1 %v194_v6  ;;  %v88_v14 = vld [vmem:[#allocation7 + $0x38] sm:$0xff]  ;;  %v189_v15 = vld [vmem:[#allocation8 + $0x50] sm:$0xff]  ;;  %v188_v17 = vld [vmem:[#allocation8 + $0x48] sm:$0xff] }
  0x37   :  { %345 = vmatpush3.msra.mxu0 %v94_v2  ;;  %377 = vmatprep.subr.mxu1 %v193_v7  ;;  %v87_v16 = vld [vmem:[#allocation7 + $0x30] sm:$0xff]  ;;  %v86_v18 = vld [vmem:[#allocation7 + $0x28] sm:$0xff]  ;;  %v187_v19 = vld [vmem:[#allocation8 + $0x40] sm:$0xff] }
  0x38   :  { %346 = vmatprep.subr.mxu0 %v93_v3  ;;  %378 = vmatpush3.msra.mxu1 %v193_v7  ;;  %v85_v20 = vld [vmem:[#allocation7 + $0x20] sm:$0xff]  ;;  %v186_v21 = vld [vmem:[#allocation8 + $0x38] sm:$0xff]  ;;  %v185_v23 = vld [vmem:[#allocation8 + $0x30] sm:$0xff] }
  0x39   :  { %347 = vmatpush3.msra.mxu0 %v93_v3  ;;  %379 = vmatprep.subr.mxu1 %v192_v9  ;;  %v84_v22 = vld [vmem:[#allocation7 + $0x18] sm:$0xff]  ;;  %v83_v24 = vld [vmem:[#allocation7 + $0x10] sm:$0xff]  ;;  %v184_v25 = vld [vmem:[#allocation8 + $0x28] sm:$0xff] }
  0x3a   :  { %348 = vmatprep.subr.mxu0 %v92_v5  ;;  %380 = vmatpush3.msra.mxu1 %v192_v9  ;;  %v82_v26 = vld [vmem:[#allocation7 + $0x8] sm:$0xff]  ;;  %v183_v27 = vld [vmem:[#allocation8 + $0x20] sm:$0xff]  ;;  %v182_v29 = vld [vmem:[#allocation8 + $0x18] sm:$0xff] }
  0x3b   :  { %349 = vmatpush3.msra.mxu0 %v92_v5  ;;  %381 = vmatprep.subr.mxu1 %v191_v11  ;;  %v81_v28 = vld [vmem:[#allocation7] sm:$0xff]  ;;  %v80_v30 = vld [vmem:[#allocation2 + $0x8] sm:$0xff]  ;;  %v181_v31 = vld [vmem:[#allocation8 + $0x10] sm:$0xff] }
  0x3c   :  { %350 = vmatprep.subr.mxu0 %v91_v8  ;;  %382 = vmatpush3.msra.mxu1 %v191_v11  ;;  %v180_v32 = vld [vmem:[#allocation8 + $0x8] sm:$0xff]  ;;  %v179_v33 = vld [vmem:[#allocation8] sm:$0xff]  ;;  %v278_v41 = vld [vmem:[#allocation5 + $0x8] sm:$0xff] }
  0x3d   :  { %351 = vmatpush3.msra.mxu0 %v91_v8  ;;  %383 = vmatprep.subr.mxu1 %v190_v13  ;;  %v302_v35 = vld [vmem:[%s606_s3] ss:$0 sm:$0xff]  ;;  %v277_v44 = vld [vmem:[#allocation5] sm:$0xff]  ;;  %s497_s3 = scalar_lea.vmem %s289_s20, 256 }
  0x3e   :  { %352 = vmatprep.subr.mxu0 %v90_v10  ;;  %384 = vmatpush3.msra.mxu1 %v190_v13  ;;  %v303_v39 = vld [vmem:[%s608_s5] ss:$0 sm:$0xff]  ;;  %p498_p6 = scmp.ne.s32.totalorder %s289_s20, %s497_s3  ;;  %p503_p8 = scmp.lt.s32.totalorder %s497_s3, %s497_s3 }
  0x3f   :  { %353 = vmatpush3.msra.mxu0 %v90_v10  ;;  %385 = vmatprep.subr.mxu1 %v189_v15 }
  0x40   :  { %354 = vmatprep.subr.mxu0 %v89_v12  ;;  %386 = vmatpush3.msra.mxu1 %v189_v15  ;;  %p504_p9 = por %p503_p8, %p502_p7 }
  0x41   :  { %355 = vmatpush3.msra.mxu0 %v89_v12  ;;  %387 = vmatprep.subr.mxu1 %v188_v17 }
  0x42   :  { %356 = vmatprep.subr.mxu0 %v88_v14  ;;  %388 = vmatpush3.msra.mxu1 %v188_v17  ;;  %p505_p10 = pnand %p504_p9, %p498_p6 }
  0x43   :  { %357 = vmatpush3.msra.mxu0 %v88_v14  ;;  %389 = vmatprep.subr.mxu1 %v187_v19 }
  0x44   :  { %358 = vmatprep.subr.mxu0 %v87_v16  ;;  %390 = vmatpush3.msra.mxu1 %v187_v19 }
  0x45   :  { %359 = vmatpush3.msra.mxu0 %v87_v16  ;;  %391 = vmatprep.subr.mxu1 %v186_v21 }
  0x46   :  { %360 = vmatprep.subr.mxu0 %v86_v18  ;;  %392 = vmatpush3.msra.mxu1 %v186_v21 }
  0x47   :  { %361 = vmatpush3.msra.mxu0 %v86_v18  ;;  %393 = vmatprep.subr.mxu1 %v185_v23 }
  0x48   :  { %362 = vmatprep.subr.mxu0 %v85_v20  ;;  %394 = vmatpush3.msra.mxu1 %v185_v23 }
  0x49   :  { %363 = vmatpush3.msra.mxu0 %v85_v20  ;;  %395 = vmatprep.subr.mxu1 %v184_v25 }
  0x4a   :  { %364 = vmatprep.subr.mxu0 %v84_v22  ;;  %396 = vmatpush3.msra.mxu1 %v184_v25 }
  0x4b   :  { %365 = vmatpush3.msra.mxu0 %v84_v22  ;;  %397 = vmatprep.subr.mxu1 %v183_v27 }
  0x4c   :  { %366 = vmatprep.subr.mxu0 %v83_v24  ;;  %398 = vmatpush3.msra.mxu1 %v183_v27 }
  0x4d   :  { %367 = vmatpush3.msra.mxu0 %v83_v24  ;;  %399 = vmatprep.subr.mxu1 %v182_v29 }
  0x4e   :  { %368 = vmatprep.subr.mxu0 %v82_v26  ;;  %400 = vmatpush3.msra.mxu1 %v182_v29 }
  0x4f   :  { %369 = vmatpush3.msra.mxu0 %v82_v26  ;;  %401 = vmatprep.subr.mxu1 %v181_v31 }
  0x50   :  { %370 = vmatprep.subr.mxu0 %v81_v28  ;;  %402 = vmatpush3.msra.mxu1 %v181_v31 }
  0x51   :  { %371 = vmatpush3.msra.mxu0 %v81_v28  ;;  %403 = vmatprep.subr.mxu1 %v180_v32 }
  0x52   :  { %373 = vmatmul.mubr.f32.vlgmr.msra.gmra.mxu0 %v80_v30  ;;  %404 = vmatpush3.msra.mxu1 %v180_v32 }
  0x53   :  { %405 = vmatprep.subr.mxu1 %v179_v33 }
  0x54   :  { %406 = vmatpush3.msra.mxu1 %v179_v33 }
 0x112   :  { %v374_v34 = vpop.f32.mrf.mxu0 }
 0x113   :  { %v176_v38 = vadd.f32 %v374_v34, %v302_v35 }
 0x114   :  { %v170_v36 = vpop.f32.mrf.mxu0 }
 0x115   :  { %v171_v37 = vadd.f32 %v302_v35, %v170_v36 }
 0x117   :  { %407 = vmatprep.mubr.f32.mxu1 %v171_v37 }
 0x118   :  { %408 = vmatmul.mubr.f32.vlgmr.msra.gmra.mxu1 %v176_v38 }
 0x1d8   :  { %v409_v40 = vpop.f32.mrf.mxu1 }
 0x1d9   :  { %v274_v42 = vadd.f32 %v409_v40, %v303_v39 }
 0x1da   :  { %v268_v43 = vpop.f32.mrf.mxu1 }
 0x1db   :  { %v280_v45 = vadd.f32 %v278_v41, %v274_v42  ;;  %v269_v46 = vadd.f32 %v303_v39, %v268_v43 }
 0x1dd   :  { %282 = vst [vmem:[#allocation10 + $0x8] sm:$0xff] %v280_v45  ;;  %v279_v47 = vadd.f32 %v277_v44, %v269_v46 }
 0x1df   :  { %281 = vst [vmem:[#allocation10] sm:$0xff] %v279_v47 }
 0x1e0   :  { %508 = shalt.err (!%p505_p10)
}
 0x1e1   :  { %294 = dma.vmem_to_hbm [thread:$0]  %s289_s20, 256, %s609_s6, [#allocation4], %s527_s26, %s527_s26, %s528_s27  }
 0x1e2   :  { %523 = dma.done.wait [#allocation4], 256  }
 0x1e3   :  { %524 = vsyncadd [#allocation4], 4294967040 }
 0x1e4   :  { %298 = vsyncpa [#allocation3], 1 }
 0x1e5   :  { %299 = vsyncpa [#allocation6], 1 }
 0x1e6   :  { %300 = vsyncpa [#allocation9], 1 }
 0x1e7   :  { %301 = vsyncpa [#allocation4], 1 }

</bundles_post_ra>
